<compile_context>
chip_gen: v6e
topology: v6e:2x2x1
jax: 0.10.0
libtpu: 0.0.40
codegen_flags: <defaults>
</compile_context>

<pallas_src>
import jax
import jax.numpy as jnp
from jax import lax
from jax.experimental import pallas as pl
from jax.experimental.pallas import tpu as pltpu


def _round_up(a, m):
    return (a + m - 1) // m * m


def _choose_tl(l_out):
    """Lane tile (multiple of 128, <=1024) minimizing padded store lanes."""
    best = None
    for tl in (128, 256, 384, 512, 640, 768, 896, 1024):
        pad = _round_up(l_out, tl) - l_out
        if best is None or pad < best[0] or (pad == best[0] and tl > best[1]):
            best = (pad, tl)
    return best[1]


def _choose_nb(n, max_nb=8):
    """Batch fold per grid step: minimize padding first, then step count."""
    best_nb, best_cost = 1, None
    for nb in range(1, min(n, max_nb) + 1):
        steps = -(-n // nb)
        cost = (steps * nb - n) * 1000 + steps
        if best_cost is None or cost < best_cost:
            best_nb, best_cost = nb, cost
    return best_nb


def conv1d_tanh_kernel(x_ref, w_ref, b_ref, o_ref):
    # x_ref: (NB, C_in, TL_halo)   halo tile of x, lane-aligned
    # w_ref: (K, C_out_pad, C_in)  per-tap weight slabs (static first-axis index)
    # b_ref: (C_out_pad, 1)
    # o_ref: (NB, C_out_pad, TL)   TL multiple of 128 -> lane-dense store
    NB, C_out_pad, TL = o_ref.shape
    K = w_ref.shape[0]

    # Hoisted once per grid step (JAX does not CSE broadcast_in_dim in loops).
    bias = jnp.broadcast_to(b_ref[...], (C_out_pad, TL))

    def body(nb, carry):
        x_blk = x_ref[nb]                       # (C_in, TL_halo), one aligned load
        # K accumulating matmuls; only the (C_out_pad, TL) f32 acc stays live.
        acc = jnp.dot(w_ref[0], x_blk[:, :TL],
                      preferred_element_type=jnp.float32)
        for k in range(1, K):
            acc = acc + jnp.dot(w_ref[k], x_blk[:, k:k + TL],
                                preferred_element_type=jnp.float32)
        o_ref[nb] = jnp.tanh(acc + bias).astype(o_ref.dtype)
        return carry

    lax.fori_loop(0, NB, body, None, unroll=True)


def cnn_layer(x, w, b):
    """x: (N, C_in, L); w: (C_out, C_in, K); b: (C_out,).
    Returns tanh(conv1d_valid(x, w) + b) of shape (N, C_out, L - K + 1)."""
    N, C_in, L = x.shape
    C_out, _, K = w.shape
    L_out = L - K + 1
    assert L_out >= 1

    # ---- tiling choices -----------------------------------------------------
    TL = _choose_tl(L_out)
    L_out_pad = _round_up(L_out, TL)
    n_l_tiles = L_out_pad // TL
    halo = _round_up(K - 1, 128) if K > 1 else 0
    TL_halo = TL + halo                      # lane-aligned halo tile width

    NB = _choose_nb(N)
    N_pad = _round_up(N, NB)
    C_out_pad = _round_up(C_out, 8)

    # ---- operand prep (wrapper-side) ----------------------------------------
    L_x_need = L_out_pad + halo              # columns needed to cover all tiles
    x_p = jnp.pad(x, ((0, N_pad - N), (0, 0), (0, L_x_need - L)))
    # Halo tiles: tile j holds x[:, :, j*TL : j*TL + TL_halo]
    x_tiles = jnp.stack(
        [lax.dynamic_slice_in_dim(x_p, j * TL, TL_halo, axis=2)
         for j in range(n_l_tiles)], axis=0)          # (n_l_tiles, N_pad, C_in, TL_halo)

    # Per-tap weight slabs: w[o, c, k] -> w_taps[k, o, c]
    w_taps = jnp.transpose(w, (2, 0, 1))
    w_taps = jnp.pad(w_taps, ((0, 0), (0, C_out_pad - C_out), (0, 0)))
    b_col = jnp.pad(b, (0, C_out_pad - C_out)).reshape(C_out_pad, 1).astype(x.dtype)

    # ---- VMEM budget (blocks are double-buffered); cap 32 MiB for v7x -------
    esz = x.dtype.itemsize
    x_blk_bytes = NB * C_in * TL_halo * esz
    o_blk_bytes = NB * C_out_pad * TL * esz
    w_bytes = K * C_out_pad * C_in * esz + C_out_pad * esz
    vmem_limit = 2 * (x_blk_bytes + o_blk_bytes) + 2 * w_bytes + (4 << 20)
    vmem_limit = min(max(vmem_limit, 8 << 20), 32 << 20)

    out = pl.pallas_call(
        conv1d_tanh_kernel,
        out_shape=jax.ShapeDtypeStruct((N_pad, C_out_pad, L_out_pad), x.dtype),
        grid_spec=pltpu.PrefetchScalarGridSpec(
            num_scalar_prefetch=0,
            grid=(N_pad // NB, n_l_tiles),
            in_specs=[
                # one O(TL) halo slab per (batch-fold, L-tile) step
                pl.BlockSpec((None, NB, C_in, TL_halo), lambda nb, j: (j, nb, 0, 0)),
                # small resident operands (full-array blocks)
                pl.BlockSpec((K, C_out_pad, C_in), lambda nb, j: (0, 0, 0)),
                pl.BlockSpec((C_out_pad, 1), lambda nb, j: (0, 0)),
            ],
            out_specs=pl.BlockSpec((NB, C_out_pad, TL), lambda nb, j: (nb, 0, j)),
        ),
        compiler_params=pltpu.CompilerParams(
            dimension_semantics=("parallel", "parallel"),
            vmem_limit_bytes=vmem_limit),
    )(x_tiles, w_taps, b_col)

    return out[:N, :C_out, :L_out]


def _reference(x, w, b):
    # Pure-JAX reference: Conv1d (valid, stride 1) + tanh.
    y = lax.conv_general_dilated(
        x, w, window_strides=(1,), padding="VALID",
        dimension_numbers=("NCH", "OIH", "NCH"))
    return jnp.tanh(y + b.reshape(1, -1, 1))


if __name__ == "__main__":
    # Small shapes consistent with Conv1d(in_dim, out_dim, kernel_size).
    N, C_in, L = 2, 4, 16
    C_out, K = 8, 3

    key = jax.random.PRNGKey(0)
    kx, kw, kb = jax.random.split(key, 3)

    x = jax.random.normal(kx, (N, C_in, L), dtype=jnp.float32)
    # Xavier-uniform-style init for the conv weight, zero bias
    # (mirrors init_weights() in the original module).
    fan_in, fan_out = C_in * K, C_out * K
    limit = (6.0 / (fan_in + fan_out)) ** 0.5
    w = jax.random.uniform(kw, (C_out, C_in, K), dtype=jnp.float32,
                           minval=-limit, maxval=limit)
    b = jnp.zeros((C_out,), dtype=jnp.float32)

    out = cnn_layer(x, w, b)
    out = jax.block_until_ready(out)

    ref = _reference(x, w, b)
    assert out.shape == (N, C_out, L - K + 1)
    assert jnp.allclose(out, ref, atol=1e-5, rtol=1e-5), "mismatch vs reference"

    print("KERNEL_OK")
</pallas_src>

<mosaic_0001>
module attributes {stable_mosaic.version = 11 : i64} {
  func.func @conv1d_tanh_kernel(%arg0: i32, %arg1: i32, %arg2: memref<1x2x4x256xf32, #tpu.memory_space<vmem>>, %arg3: memref<3x8x4xf32, #tpu.memory_space<vmem>>, %arg4: memref<8x1xf32, #tpu.memory_space<vmem>>, %arg5: memref<2x8x128xf32, #tpu.memory_space<vmem>>) attributes {dimension_semantics = [#tpu.dimension_semantics<parallel>, #tpu.dimension_semantics<parallel>], iteration_bounds = array<i64: 1, 1>, scalar_prefetch = 0 : i64, scratch_operands = 0 : i64, tpu.core_type = #tpu.core_type<tc>, window_params = [{transform_indices = @transform_0, window_bounds = array<i64: 1, 2, 4, 256>}, {pipeline_mode = #tpu.pipeline_mode<synchronous>, transform_indices = @transform_1, window_bounds = array<i64: 3, 8, 4>}, {pipeline_mode = #tpu.pipeline_mode<synchronous>, transform_indices = @transform_2, window_bounds = array<i64: 8, 1>}, {transform_indices = @transform_3, window_bounds = array<i64: 2, 8, 128>}]} {
    %c0 = arith.constant 0 : index
    %c0_0 = arith.constant 0 : index
    %0 = vector.load %arg4[%c0, %c0_0] : memref<8x1xf32, #tpu.memory_space<vmem>>, vector<8x1xf32>
    %1 = vector.shape_cast %0 : vector<8x1xf32> to vector<8x1xf32>
    %2 = vector.broadcast %1 : vector<8x1xf32> to vector<8x128xf32>
    %c0_i32 = arith.constant 0 : i32
    %c0_1 = arith.constant 0 : index
    %3 = arith.index_cast %c0_i32 : i32 to index
    %c0_2 = arith.constant 0 : index
    %c0_3 = arith.constant 0 : index
    %4 = vector.load %arg2[%c0_1, %3, %c0_2, %c0_3] : memref<1x2x4x256xf32, #tpu.memory_space<vmem>>, vector<1x1x4x256xf32>
    %5 = vector.shape_cast %4 : vector<1x1x4x256xf32> to vector<4x256xf32>
    %c0_4 = arith.constant 0 : index
    %c0_5 = arith.constant 0 : index
    %c0_6 = arith.constant 0 : index
    %6 = vector.load %arg3[%c0_4, %c0_5, %c0_6] : memref<3x8x4xf32, #tpu.memory_space<vmem>>, vector<1x8x4xf32>
    %7 = vector.shape_cast %6 : vector<1x8x4xf32> to vector<8x4xf32>
    %8 = vector.extract_strided_slice %5 {offsets = [0, 0], sizes = [4, 128], strides = [1, 1]} : vector<4x256xf32> to vector<4x128xf32>
    %cst = arith.constant dense<0.000000e+00> : vector<8x128xf32>
    %9 = tpu.matmul %7, %8, %cst {dimension_numbers = #tpu.dot_dimension_numbers<[1], [0], [0], [1], [0, 0, 1, 1], [], []>} : vector<8x4xf32>, vector<4x128xf32>, vector<8x128xf32> -> vector<8x128xf32>
    %c1 = arith.constant 1 : index
    %c0_7 = arith.constant 0 : index
    %c0_8 = arith.constant 0 : index
    %10 = vector.load %arg3[%c1, %c0_7, %c0_8] : memref<3x8x4xf32, #tpu.memory_space<vmem>>, vector<1x8x4xf32>
    %11 = vector.shape_cast %10 : vector<1x8x4xf32> to vector<8x4xf32>
    %12 = vector.extract_strided_slice %5 {offsets = [0, 1], sizes = [4, 128], strides = [1, 1]} : vector<4x256xf32> to vector<4x128xf32>
    %cst_9 = arith.constant dense<0.000000e+00> : vector<8x128xf32>
    %13 = tpu.matmul %11, %12, %cst_9 {dimension_numbers = #tpu.dot_dimension_numbers<[1], [0], [0], [1], [0, 0, 1, 1], [], []>} : vector<8x4xf32>, vector<4x128xf32>, vector<8x128xf32> -> vector<8x128xf32>
    %14 = arith.addf %9, %13 : vector<8x128xf32>
    %c2 = arith.constant 2 : index
    %c0_10 = arith.constant 0 : index
    %c0_11 = arith.constant 0 : index
    %15 = vector.load %arg3[%c2, %c0_10, %c0_11] : memref<3x8x4xf32, #tpu.memory_space<vmem>>, vector<1x8x4xf32>
    %16 = vector.shape_cast %15 : vector<1x8x4xf32> to vector<8x4xf32>
    %17 = vector.extract_strided_slice %5 {offsets = [0, 2], sizes = [4, 128], strides = [1, 1]} : vector<4x256xf32> to vector<4x128xf32>
    %cst_12 = arith.constant dense<0.000000e+00> : vector<8x128xf32>
    %18 = tpu.matmul %16, %17, %cst_12 {dimension_numbers = #tpu.dot_dimension_numbers<[1], [0], [0], [1], [0, 0, 1, 1], [], []>} : vector<8x4xf32>, vector<4x128xf32>, vector<8x128xf32> -> vector<8x128xf32>
    %19 = arith.addf %14, %18 : vector<8x128xf32>
    %20 = arith.addf %19, %2 : vector<8x128xf32>
    %21 = math.tanh %20 : vector<8x128xf32>
    %22 = arith.index_cast %c0_i32 : i32 to index
    %c0_13 = arith.constant 0 : index
    %c0_14 = arith.constant 0 : index
    %23 = vector.load %arg5[%22, %c0_13, %c0_14] : memref<2x8x128xf32, #tpu.memory_space<vmem>>, vector<1x8x128xf32>
    %24 = vector.shape_cast %23 : vector<1x8x128xf32> to vector<8x128xf32>
    %25 = vector.shape_cast %21 : vector<8x128xf32> to vector<1x8x128xf32>
    tpu.vector_store %arg5[%22, %c0_13, %c0_14], %25 {strides = array<i32>} : memref<2x8x128xf32, #tpu.memory_space<vmem>>, vector<1x8x128xf32>,
    %c1_i32 = arith.constant 1 : i32
    %c0_15 = arith.constant 0 : index
    %26 = arith.index_cast %c1_i32 : i32 to index
    %c0_16 = arith.constant 0 : index
    %c0_17 = arith.constant 0 : index
    %27 = vector.load %arg2[%c0_15, %26, %c0_16, %c0_17] : memref<1x2x4x256xf32, #tpu.memory_space<vmem>>, vector<1x1x4x256xf32>
    %28 = vector.shape_cast %27 : vector<1x1x4x256xf32> to vector<4x256xf32>
    %c0_18 = arith.constant 0 : index
    %c0_19 = arith.constant 0 : index
    %c0_20 = arith.constant 0 : index
    %29 = vector.load %arg3[%c0_18, %c0_19, %c0_20] : memref<3x8x4xf32, #tpu.memory_space<vmem>>, vector<1x8x4xf32>
    %30 = vector.shape_cast %29 : vector<1x8x4xf32> to vector<8x4xf32>
    %31 = vector.extract_strided_slice %28 {offsets = [0, 0], sizes = [4, 128], strides = [1, 1]} : vector<4x256xf32> to vector<4x128xf32>
    %cst_21 = arith.constant dense<0.000000e+00> : vector<8x128xf32>
    %32 = tpu.matmul %30, %31, %cst_21 {dimension_numbers = #tpu.dot_dimension_numbers<[1], [0], [0], [1], [0, 0, 1, 1], [], []>} : vector<8x4xf32>, vector<4x128xf32>, vector<8x128xf32> -> vector<8x128xf32>
    %c1_22 = arith.constant 1 : index
    %c0_23 = arith.constant 0 : index
    %c0_24 = arith.constant 0 : index
    %33 = vector.load %arg3[%c1_22, %c0_23, %c0_24] : memref<3x8x4xf32, #tpu.memory_space<vmem>>, vector<1x8x4xf32>
    %34 = vector.shape_cast %33 : vector<1x8x4xf32> to vector<8x4xf32>
    %35 = vector.extract_strided_slice %28 {offsets = [0, 1], sizes = [4, 128], strides = [1, 1]} : vector<4x256xf32> to vector<4x128xf32>
    %cst_25 = arith.constant dense<0.000000e+00> : vector<8x128xf32>
    %36 = tpu.matmul %34, %35, %cst_25 {dimension_numbers = #tpu.dot_dimension_numbers<[1], [0], [0], [1], [0, 0, 1, 1], [], []>} : vector<8x4xf32>, vector<4x128xf32>, vector<8x128xf32> -> vector<8x128xf32>
    %37 = arith.addf %32, %36 : vector<8x128xf32>
    %c2_26 = arith.constant 2 : index
    %c0_27 = arith.constant 0 : index
    %c0_28 = arith.constant 0 : index
    %38 = vector.load %arg3[%c2_26, %c0_27, %c0_28] : memref<3x8x4xf32, #tpu.memory_space<vmem>>, vector<1x8x4xf32>
    %39 = vector.shape_cast %38 : vector<1x8x4xf32> to vector<8x4xf32>
    %40 = vector.extract_strided_slice %28 {offsets = [0, 2], sizes = [4, 128], strides = [1, 1]} : vector<4x256xf32> to vector<4x128xf32>
    %cst_29 = arith.constant dense<0.000000e+00> : vector<8x128xf32>
    %41 = tpu.matmul %39, %40, %cst_29 {dimension_numbers = #tpu.dot_dimension_numbers<[1], [0], [0], [1], [0, 0, 1, 1], [], []>} : vector<8x4xf32>, vector<4x128xf32>, vector<8x128xf32> -> vector<8x128xf32>
    %42 = arith.addf %37, %41 : vector<8x128xf32>
    %43 = arith.addf %42, %2 : vector<8x128xf32>
    %44 = math.tanh %43 : vector<8x128xf32>
    %45 = arith.index_cast %c1_i32 : i32 to index
    %c0_30 = arith.constant 0 : index
    %c0_31 = arith.constant 0 : index
    %46 = vector.load %arg5[%45, %c0_30, %c0_31] : memref<2x8x128xf32, #tpu.memory_space<vmem>>, vector<1x8x128xf32>
    %47 = vector.shape_cast %46 : vector<1x8x128xf32> to vector<8x128xf32>
    %48 = vector.shape_cast %44 : vector<8x128xf32> to vector<1x8x128xf32>
    tpu.vector_store %arg5[%45, %c0_30, %c0_31], %48 {strides = array<i32>} : memref<2x8x128xf32, #tpu.memory_space<vmem>>, vector<1x8x128xf32>,
    %c2_i32 = arith.constant 2 : i32
    return
  }
  func.func @transform_0(%arg0: i32, %arg1: i32) -> (i32, i32, i32, i32) {
    %c0_i32 = arith.constant 0 : i32
    %c0_i32_0 = arith.constant 0 : i32
    %c0_i32_1 = arith.constant 0 : i32
    return %arg1, %arg0, %c0_i32, %c0_i32_0 : i32, i32, i32, i32
  }
  func.func @transform_1(%arg0: i32, %arg1: i32) -> (i32, i32, i32) {
    %c0_i32 = arith.constant 0 : i32
    %c0_i32_0 = arith.constant 0 : i32
    %c0_i32_1 = arith.constant 0 : i32
    %c0_i32_2 = arith.constant 0 : i32
    return %c0_i32, %c0_i32_0, %c0_i32_1 : i32, i32, i32
  }
  func.func @transform_2(%arg0: i32, %arg1: i32) -> (i32, i32) {
    %c0_i32 = arith.constant 0 : i32
    %c0_i32_0 = arith.constant 0 : i32
    %c0_i32_1 = arith.constant 0 : i32
    return %c0_i32, %c0_i32_0 : i32, i32
  }
  func.func @transform_3(%arg0: i32, %arg1: i32) -> (i32, i32, i32) {
    %c0_i32 = arith.constant 0 : i32
    %c0_i32_0 = arith.constant 0 : i32
    return %arg0, %c0_i32, %arg1 : i32, i32, i32
  }
}

</mosaic_0001>

<bundles_post_ra>
// kernel: tpu_custom_call.1
= control target key start
LH: loop header
LB: loop body
LE: loop exit
PB: predicated region body
PF: predicated region fallthrough
CT: control target
= control target key end

     0   :  { %s631_s14 = smov 126   ;;  %s632_s15 = smov 127   ;;  %vm37_vm0 = vcmask 1043456   ;;  %v633_v3 = vmov 0.0   ;;  %vm634_vm1 = vmmov 0   ;;  %vm33_vm2 = vcmask 31744   ;;  %s700_s0 = inlined_call_operand.vmem [shape: f32[1,2,4,256], index: 0, kind: input, shape index: {}]   ;;  %s701_s1 = inlined_call_operand.vmem [shape: f32[3,8,4], index: 1, kind: input, shape index: {}]   ;;  %s702_s2 = inlined_call_operand.vmem [shape: f32[8,1], index: 2, kind: input, shape index: {}]   ;;  %s703_s3 = inlined_call_operand.hbm [shape: f32[2,8,128], index: 3, kind: output, shape index: {}]  }
   0x1   :  { %v21_v0 = vld [vmem:[%s700_s0] sm:$0xff]  ;;  %v543_v2 = vld [vmem:[%s700_s0 + $0x8] sm:$0xff]  ;;  %564 = vmatprep.subr.mxu0 %v633_v3  ;;  %569 = vmatprep.subr.mxu1 %v633_v3 }
   0x2   :  { %187 = vrot.lane.b32.xlu1 %v21_v0, %s631_s14  ;;  %27 = vrot.lane.b32.xlu0 %v21_v0, %s632_s15  ;;  %v26_v1 = vcombine.high %v21_v0, %v21_v0  ;;  %v22_v4 = vld [vmem:[%s701_s1] sm:$0xff] }
   0x3   :  { %566 = vmatprep.mubr.msk.f32.mxu0 %vm634_vm1, %v633_v3  ;;  %570 = vmatpush3.msk.msra.mxu1 %vm37_vm0, %v21_v0 }
   0x4   :  { %8 = vsyncpa [#allocation3], 0  ;;  %571 = vmatprep.mubr.msk.f32.mxu1 %vm634_vm1, %v633_v3  ;;  %579 = vmatprep.subr.mxu1 %v633_v3  ;;  %v277_v5 = vcombine.high %v543_v2, %v543_v2  ;;  %v635_v6 = vmov 0   ;;  %v15_v7 = vld [vmem:[%s702_s2] sm:$0xff]  ;;  %vm31_vm3 = vcmask 1039360   ;;  %vm191_vm4 = vcmask 1031168  }
   0x5   :  { %572 = vmatmul.mubr.msk.f32.vlgmr.msra.gmra.mxu1 %vm33_vm2, %v22_v4  ;;  %602 = vset.pattern.permute.xlu0 %v635_v6  ;;  %v535_v12 = vld [vmem:[%s701_s1 + $0x8] sm:$0xff]  ;;  %v540_v17 = vld [vmem:[%s701_s1 + $0x10] sm:$0xff]  ;;  %s636_s1 = smov [#allocation2]  }
   0x6   :  { %189 = vrot.lane.b32.xlu1 %v26_v1, %s631_s14  ;;  %29 = vrot.lane.b32.xlu0 %v26_v1, %s632_s15  ;;  %s524_s24 = sshll.u32 %s636_s1, 4  ;;  %s525_s24 = int_to_ptr.vmem [resolvable:$true] %s524_s24 }
   0x7   :  { %581 = vmatprep.mubr.msk.f32.mxu1 %vm634_vm1, %v633_v3  ;;  %s609_s25 = scalar_lea.vmem %s525_s24, 256  ;;  %p614_p1 = scmp.lt.s32.totalorder %s525_s24, %s525_s24 }
   0x8   :  { %p610_p0 = scmp.ne.s32.totalorder %s525_s24, %s609_s25  ;;  %p615_p2 = scmp.lt.s32.totalorder %s609_s25, %s609_s25 }
   0xa   :  { %280 = vrot.lane.b32.xlu1 %v277_v5, %s632_s15  ;;  %278 = vrot.lane.b32.xlu0 %v543_v2, %s632_s15  ;;  %p616_p3 = por %p615_p2, %p614_p1 }
   0xc   :  { %p617_p4 = pnand %p616_p3, %p610_p0 }
   0xe   :  { %436 = vrot.lane.b32.xlu1 %v277_v5, %s631_s14  ;;  %434 = vrot.lane.b32.xlu0 %v543_v2, %s631_s14 }
  0x12   :  { %18 = vperm.xlu0 %602, %v15_v7  }
  0x74   :  { %v188_v8 = vpop.permute.xlu1 %187  ;;  %v28_v9 = vpop.permute.xlu0 %27 }
  0x78   :  { %v190_v10 = vpop.permute.xlu1 %189  ;;  %v30_v11 = vpop.permute.xlu0 %29 }
  0x79   :  { %v32_v13 = vsel %vm31_vm3, %v28_v9, %v30_v11  ;;  %v192_v14 = vsel %vm191_vm4, %v188_v8, %v190_v10 }
  0x7a   :  { %565 = vmatpush3.msk.msra.mxu0 %vm37_vm0, %v32_v13 }
  0x7b   :  { %567 = vmatmul.mubr.msk.f32.vlgmr.msra.gmra.mxu0 %vm33_vm2, %v535_v12  ;;  %574 = vmatprep.subr.mxu0 %v633_v3 }
  0x7c   :  { %v281_v15 = vpop.permute.xlu1 %280  ;;  %575 = vmatpush3.msk.msra.mxu0 %vm37_vm0, %v192_v14  ;;  %v279_v16 = vpop.permute.xlu0 %278  ;;  %576 = vmatprep.mubr.msk.f32.mxu0 %vm634_vm1, %v633_v3 }
  0x7d   :  { %v282_v18 = vsel %vm31_vm3, %v279_v16, %v281_v15  ;;  %584 = vmatprep.subr.mxu0 %v633_v3 }
  0x7e   :  { %580 = vmatpush3.msk.msra.mxu1 %vm37_vm0, %v282_v18 }
  0x7f   :  { %577 = vmatmul.mubr.msk.f32.vlgmr.msra.gmra.mxu0 %vm33_vm2, %v540_v17  ;;  %582 = vmatmul.mubr.msk.f32.vlgmr.msra.gmra.mxu1 %vm33_vm2, %v535_v12 }
  0x80   :  { %v437_v19 = vpop.permute.xlu1 %436  ;;  %585 = vmatpush3.msk.msra.mxu0 %vm37_vm0, %v543_v2  ;;  %v435_v20 = vpop.permute.xlu0 %434  ;;  %589 = vmatprep.subr.mxu1 %v633_v3 }
  0x81   :  { %v438_v21 = vsel %vm191_vm4, %v435_v20, %v437_v19  ;;  %586 = vmatprep.mubr.msk.f32.mxu0 %vm634_vm1, %v633_v3  ;;  %591 = vmatprep.mubr.msk.f32.mxu1 %vm634_vm1, %v633_v3 }
  0x82   :  { %590 = vmatpush3.msk.msra.mxu1 %vm37_vm0, %v438_v21 }
  0x83   :  { %587 = vmatmul.mubr.msk.f32.vlgmr.msra.gmra.mxu0 %vm33_vm2, %v22_v4  ;;  %592 = vmatmul.mubr.msk.f32.vlgmr.msra.gmra.mxu1 %vm33_vm2, %v540_v17 }
  0x8d   :  { %v19_v27 = vpop.permute.xlu0 %18 }
  0xc5   :  { %v181_v22 = vpop.f32.mrf.mxu1 }
  0xc7   :  { %v573_v23 = vpop.f32.mrf.mxu1 }
 0x13b   :  { %v106_v24 = vpop.f32.mrf.mxu0 }
 0x13c   :  { %v182_v26 = vadd.f32 %v181_v22, %v106_v24 }
 0x13d   :  { %v568_v25 = vpop.f32.mrf.mxu0 }
 0x13f   :  { %v264_v28 = vpop.f32.mrf.mxu0  ;;  %v354_v29 = vpop.f32.mrf.mxu1 }
 0x140   :  { %v268_v30 = vadd.f32 %v264_v28, %v182_v26 }
 0x141   :  { %v578_v31 = vpop.f32.mrf.mxu0  ;;  %v583_v32 = vpop.f32.mrf.mxu1 }
 0x142   :  { %v269_v33 = vadd.f32 %v268_v30, %v19_v27 }
 0x143   :  { %v429_v34 = vpop.f32.mrf.mxu0  ;;  %v510_v35 = vpop.f32.mrf.mxu1 }
 0x144   :  { %605 = vtanh.f32 %v269_v33  ;;  %v430_v36 = vadd.f32 %v429_v34, %v354_v29 }
 0x145   :  { %v588_v37 = vpop.f32.mrf.mxu0  ;;  %v593_v38 = vpop.f32.mrf.mxu1 }
 0x146   :  { %v514_v39 = vadd.f32 %v510_v35, %v430_v36 }
 0x148   :  { %v515_v40 = vadd.f32 %v514_v39, %v19_v27 }
 0x14a   :  { %607 = vtanh.f32 %v515_v40 }
 0x151   :  { %v606_v41 = vpop.eup %605 }
 0x152   :  { %271 = vst [vmem:[#allocation2] sm:$0xff] %v606_v41 }
 0x157   :  { %v608_v42 = vpop.eup %607 }
 0x158   :  { %518 = vst [vmem:[#allocation2 + $0x8] sm:$0xff] %v608_v42 }
 0x159   :  { %620 = shalt.err (!%p617_p4)
}
 0x15a   :  { %s637_s26 = smov 128   ;;  %s638_s27 = smov 8  }
 0x15b   :  { %530 = dma.vmem_to_hbm [thread:$0]  %s525_s24, 256, %s703_s3, [#allocation3], %s637_s26, %s637_s26, %s638_s27  }
 0x15c   :  { %629 = dma.done.wait [#allocation3], 256  }
 0x15d   :  { %630 = vsyncadd [#allocation3], 4294967040 }
 0x15e   :  { %534 = vsyncpa [#allocation3], 1 }

</bundles_post_ra>
